<compile_context>
chip_gen: v7x
topology: tpu7x:2x2x1
jax: 0.10.0
libtpu: 0.0.40
codegen_flags: <defaults>
</compile_context>

<pallas_src>
import jax
import jax.numpy as jnp
from jax import lax
from jax.experimental import pallas as pl
from jax.experimental.pallas import tpu as pltpu


def patch_embed_kernel(pt_ref, wt_ref, b_ref, o_ref):
    """Fused patch projection for one (batch, patch-tile) grid step.

    pt_ref : (1, K, TP)  patches, K = C*p^3 on sublanes, TP patches on lanes
    wt_ref : (E, K)      flattened Conv3d weight (transposed)
    b_ref  : (E, 1)      Conv3d bias as a column (broadcasts over lanes)
    o_ref  : (1, E, TP)  channel-first output tile (lane-dense on TP)
    """
    acc = jnp.dot(wt_ref[...], pt_ref[0], preferred_element_type=jnp.float32)
    o_ref[0] = acc + b_ref[...]


def _pick_patch_tile(p_total, max_tile=1024):
    """Largest lane-aligned tile of the patch axis that divides p_total."""
    if p_total <= max_tile:
        return p_total
    for t in range(max_tile, 127, -128):
        if p_total % t == 0:
            return t
    return p_total  # fall back to a single tile


def patch_embed_forward(x, w, b, patch_size=4):
    """PatchEmbed.forward.

    x : (N, C, H, W, T) float32
    w : (E, C, p, p, p) Conv3d weight (OIDHW)
    b : (E,)            Conv3d bias
    returns (N, E, H//p, W//p, T//p)
    """
    p = int(patch_size)
    n, c, H, W, T = x.shape
    e = w.shape[0]

    # --- replicate torch.nn.functional.pad calls of the original literally ---
    # F.pad pads from the LAST dim backwards, so in the original code the
    # "W % p" check pads dim -1, the "H % p" check pads dim -2 and the
    # "T % p" check pads dim -3.  (All are no-ops for divisible shapes.)
    pad_d3 = (p - W % p) % p  # applied to dim -1
    pad_d2 = (p - H % p) % p  # applied to dim -2
    pad_d1 = (p - T % p) % p  # applied to dim -3
    if pad_d1 or pad_d2 or pad_d3:
        x = jnp.pad(x, ((0, 0), (0, 0), (0, pad_d1), (0, pad_d2), (0, pad_d3)))

    # Conv3d(kernel=stride=p) floors any leftover extent; crop to exact multiples
    # so the reshape-based im2col matches the conv output grid.
    d1, d2, d3 = x.shape[2], x.shape[3], x.shape[4]
    g1, g2, g3 = d1 // p, d2 // p, d3 // p
    x = x[:, :, : g1 * p, : g2 * p, : g3 * p]

    k = c * p * p * p
    n_patches = g1 * g2 * g3

    # Non-overlapping im2col == pure layout shuffle (no data blow-up):
    # (N, C, g1, p, g2, p, g3, p) -> (N, [C,p,p,p]=K, [g1,g2,g3]=P)
    xr = x.reshape(n, c, g1, p, g2, p, g3, p)
    xr = jnp.transpose(xr, (0, 1, 3, 5, 7, 2, 4, 6))
    patches_t = xr.reshape(n, k, n_patches).astype(jnp.float32)

    w_t = w.reshape(e, k).astype(jnp.float32)      # (E, K)
    b_col = b.reshape(e, 1).astype(jnp.float32)    # (E, 1)

    tp = _pick_patch_tile(n_patches)
    out = pl.pallas_call(
        patch_embed_kernel,
        out_shape=jax.ShapeDtypeStruct((n, e, n_patches), jnp.float32),
        grid=(n, n_patches // tp),
        in_specs=[
            pl.BlockSpec((1, k, tp), lambda bi, j: (bi, 0, j)),
            pl.BlockSpec((e, k), lambda bi, j: (0, 0)),
            pl.BlockSpec((e, 1), lambda bi, j: (0, 0)),
        ],
        out_specs=pl.BlockSpec((1, e, tp), lambda bi, j: (bi, 0, j)),
        compiler_params=pltpu.CompilerParams(
            dimension_semantics=("parallel", "parallel")
        ),
    )(patches_t, w_t, b_col)

    # (N, E, P) is already channel-first: just unflatten the patch grid.
    return out.reshape(n, e, g1, g2, g3)


def reference_forward(x, w, b, patch_size=4):
    """Pure-JAX reference mirroring the PyTorch module (pad + Conv3d + bias)."""
    p = int(patch_size)
    _, _, H, W, T = x.shape
    pad_d3 = (p - W % p) % p
    pad_d2 = (p - H % p) % p
    pad_d1 = (p - T % p) % p
    if pad_d1 or pad_d2 or pad_d3:
        x = jnp.pad(x, ((0, 0), (0, 0), (0, pad_d1), (0, pad_d2), (0, pad_d3)))
    dn = ("NCDHW", "OIDHW", "NCDHW")
    y = lax.conv_general_dilated(
        x, w, (p, p, p), "VALID",
        dimension_numbers=dn, precision=lax.Precision.HIGHEST,
    )
    return y + b.reshape(1, -1, 1, 1, 1)


if __name__ == "__main__":
    # PatchEmbed(patch_size=4, in_chans=3, embed_dim=96, norm_layer=None)
    N, C, H, W, T = 2, 3, 16, 16, 16
    P_SZ, E = 4, 96

    key = jax.random.PRNGKey(0)
    kx, kw, kb = jax.random.split(key, 3)
    x = jax.random.normal(kx, (N, C, H, W, T), jnp.float32)
    w = jax.random.normal(kw, (E, C, P_SZ, P_SZ, P_SZ), jnp.float32) * 0.05
    b = jax.random.normal(kb, (E,), jnp.float32) * 0.05

    out = patch_embed_forward(x, w, b, patch_size=P_SZ)
    out = jax.block_until_ready(out)

    ref = reference_forward(x, w, b, patch_size=P_SZ)
    assert out.shape == (N, E, H // P_SZ, W // P_SZ, T // P_SZ), out.shape
    max_err = float(jnp.max(jnp.abs(out - ref)))
    assert max_err < 1e-3, f"mismatch vs reference: {max_err}"

    print("KERNEL_OK")
</pallas_src>

<mosaic_0001>
module attributes {stable_mosaic.version = 11 : i64} {
  func.func @patch_embed_kernel(%arg0: i32, %arg1: i32, %arg2: memref<1x192x64xf32, #tpu.memory_space<vmem>>, %arg3: memref<96x192xf32, #tpu.memory_space<vmem>>, %arg4: memref<96x1xf32, #tpu.memory_space<vmem>>, %arg5: memref<1x96x64xf32, #tpu.memory_space<vmem>>) attributes {dimension_semantics = [#tpu.dimension_semantics<parallel>, #tpu.dimension_semantics<parallel>], iteration_bounds = array<i64: 2, 1>, scalar_prefetch = 0 : i64, scratch_operands = 0 : i64, tpu.core_type = #tpu.core_type<tc>, window_params = [{transform_indices = @transform_0, window_bounds = array<i64: 1, 192, 64>}, {pipeline_mode = #tpu.pipeline_mode<synchronous>, transform_indices = @transform_1, window_bounds = array<i64: 96, 192>}, {pipeline_mode = #tpu.pipeline_mode<synchronous>, transform_indices = @transform_2, window_bounds = array<i64: 96, 1>}, {transform_indices = @transform_3, window_bounds = array<i64: 1, 96, 64>}]} {
    %c0 = arith.constant 0 : index
    %c0_0 = arith.constant 0 : index
    %0 = vector.load %arg3[%c0, %c0_0] : memref<96x192xf32, #tpu.memory_space<vmem>>, vector<96x192xf32>
    %c0_1 = arith.constant 0 : index
    %c0_2 = arith.constant 0 : index
    %c0_3 = arith.constant 0 : index
    %1 = vector.load %arg2[%c0_1, %c0_2, %c0_3] : memref<1x192x64xf32, #tpu.memory_space<vmem>>, vector<1x192x64xf32>
    %2 = vector.shape_cast %1 : vector<1x192x64xf32> to vector<192x64xf32>
    %cst = arith.constant dense<0.000000e+00> : vector<96x64xf32>
    %3 = tpu.matmul %0, %2, %cst {dimension_numbers = #tpu.dot_dimension_numbers<[1], [0], [0], [1], [0, 0, 1, 1], [], []>} : vector<96x192xf32>, vector<192x64xf32>, vector<96x64xf32> -> vector<96x64xf32>
    %c0_4 = arith.constant 0 : index
    %c0_5 = arith.constant 0 : index
    %4 = vector.load %arg4[%c0_4, %c0_5] : memref<96x1xf32, #tpu.memory_space<vmem>>, vector<96x1xf32>
    %5 = vector.broadcast %4 : vector<96x1xf32> to vector<96x64xf32>
    %6 = arith.addf %3, %5 : vector<96x64xf32>
    %c0_6 = arith.constant 0 : index
    %c0_7 = arith.constant 0 : index
    %c0_8 = arith.constant 0 : index
    %7 = vector.load %arg5[%c0_6, %c0_7, %c0_8] : memref<1x96x64xf32, #tpu.memory_space<vmem>>, vector<1x96x64xf32>
    %8 = vector.shape_cast %7 : vector<1x96x64xf32> to vector<96x64xf32>
    %9 = vector.shape_cast %6 : vector<96x64xf32> to vector<1x96x64xf32>
    tpu.vector_store %arg5[%c0_6, %c0_7, %c0_8], %9 {strides = array<i32>} : memref<1x96x64xf32, #tpu.memory_space<vmem>>, vector<1x96x64xf32>,
    return
  }
  func.func @transform_0(%arg0: i32, %arg1: i32) -> (i32, i32, i32) {
    %c0_i32 = arith.constant 0 : i32
    %c0_i32_0 = arith.constant 0 : i32
    return %arg0, %c0_i32, %arg1 : i32, i32, i32
  }
  func.func @transform_1(%arg0: i32, %arg1: i32) -> (i32, i32) {
    %c0_i32 = arith.constant 0 : i32
    %c0_i32_0 = arith.constant 0 : i32
    %c0_i32_1 = arith.constant 0 : i32
    return %c0_i32, %c0_i32_0 : i32, i32
  }
  func.func @transform_2(%arg0: i32, %arg1: i32) -> (i32, i32) {
    %c0_i32 = arith.constant 0 : i32
    %c0_i32_0 = arith.constant 0 : i32
    %c0_i32_1 = arith.constant 0 : i32
    return %c0_i32, %c0_i32_0 : i32, i32
  }
  func.func @transform_3(%arg0: i32, %arg1: i32) -> (i32, i32, i32) {
    %c0_i32 = arith.constant 0 : i32
    %c0_i32_0 = arith.constant 0 : i32
    return %arg0, %c0_i32, %arg1 : i32, i32, i32
  }
}

</mosaic_0001>

<bundles_post_ra>
// kernel: tpu_custom_call.1
= control target key start
LH: loop header
LB: loop body
LE: loop exit
PB: predicated region body
PF: predicated region fallthrough
CT: control target
= control target key end

     0   :  { %s736_s12 = smov 0   ;;  %s738_s13 = smov 0   ;;  %s969_s0 = inlined_call_operand.vmem [shape: f32[2,192,64], index: 0, kind: input, shape index: {}]   ;;  %s970_s1 = inlined_call_operand.vmem [shape: f32[96,192], index: 1, kind: input, shape index: {}]   ;;  %s971_s2 = inlined_call_operand.vmem [shape: f32[96,1], index: 2, kind: input, shape index: {}]   ;;  %s972_s3 = inlined_call_operand.vmem [shape: f32[2,96,64], index: 3, kind: output, shape index: {}]  }
   0x1   :  { %s740_s14 = smov 0  }
   0x2 LB: > { %s25_s15 = sadd.s32 1, %s708_s13  ;;  %p583_p0 = scmp.ge.s32.totalorder %s712_s14, 1  ;;  %s712_s14 = sphi %s740_s14, %s13_s14   ;;  %s708_s13 = sphi %s738_s13, %s974_s13   ;;  %s704_s12 = sphi %s736_s12, %s973_s12  }
   0x3   : > { %p27_p1 = scmp.ge.s32.totalorder %s25_s15, 2  ;;  %p156_p2 = scmp.lt.s32.totalorder %s712_s14, 3 }
   0x5   : > { %s976_s15 = smov (%p27_p1, %s25_s15), 0  ;;  %p157_p3 = pnand %p583_p0, %p156_p2 }
   0x6   : > { %p186_p4 = scmp.lt.s32.totalorder (!%p157_p3), %s704_s12, 1  ;;  %v203_v0 = vld [vmem:[%s970_s1 + $0x8] sm:$0xff] (!%p157_p3)  ;;  %vm322_vm0 = vcmask (!%p157_p3), 523264   ;;  %v714_v2 = vmov (!%p157_p3), 0.0|0.0   ;;  %v715_v3 = vmov (!%p157_p3), 0   ;;  %v252_v15 = vld [vmem:[%s971_s2 + $0x10] sm:$0xff] (!%p157_p3) }
   0x7   : > { %160 = sbr.rel (%p157_p3) target bundleno = 303 (0x12f), region = 32  ;;  %v215_v1 = vld [vmem:[%s970_s1 + $0x68] sm:$0xff] (!%p157_p3)  ;;  %600 = vmatprep.subr.bf16.mxu0 (!%p157_p3), %v714_v2  ;;  %636 = vmatprep.subr.bf16.mxu1 (!%p157_p3), %v714_v2  ;;  %v250_v16 = vld [vmem:[%s971_s2] sm:$0xff] (!%p157_p3)  ;;  %v253_v18 = vld [vmem:[%s971_s2 + $0x18] sm:$0xff] (!%p157_p3) }
   0x8   : > { %586 = vmatprep.mubr.msk.f32.mxu0 (!%p157_p3), %vm322_vm0, %v203_v0  ;;  %592 = vmatprep.mubr.msk.f32.mxu1 (!%p157_p3), %vm322_vm0, %v215_v1  ;;  %v251_v19 = vld [vmem:[%s971_s2 + $0x8] sm:$0xff] (!%p157_p3)  ;;  %v254_v24 = vld [vmem:[%s971_s2 + $0x20] sm:$0xff] (!%p157_p3)  ;;  %v257_v28 = vld [vmem:[%s971_s2 + $0x38] sm:$0xff] (!%p157_p3) }
   0x9   : > { %689 = vset.pattern.permute.xlu1 (!%p157_p3), %v715_v3  ;;  %688 = vset.pattern.permute.xlu0 (!%p157_p3), %v715_v3  ;;  %v255_v23 = vld [vmem:[%s971_s2 + $0x28] sm:$0xff] (!%p157_p3)  ;;  %v256_v29 = vld [vmem:[%s971_s2 + $0x30] sm:$0xff] (!%p157_p3)  ;;  %v258_v34 = vld [vmem:[%s971_s2 + $0x40] sm:$0xff] (!%p157_p3) }
   0xa   : > { %274 = vperm.xlu1 (!%p157_p3), %689, %v252_v15   ;;  %264 = vperm.xlu0 (!%p157_p3), %688, %v250_v16   ;;  %v259_v33 = vld [vmem:[%s971_s2 + $0x48] sm:$0xff] (!%p157_p3)  ;;  %v261_v38 = vld [vmem:[%s971_s2 + $0x58] sm:$0xff] (!%p157_p3)  ;;  %v260_v39 = vld [vmem:[%s971_s2 + $0x50] sm:$0xff] (!%p157_p3) }
   0xb   : > { %v202_v52 = vld [vmem:[%s970_s1] sm:$0xff] (!%p157_p3)  ;;  %v205_v54 = vld [vmem:[%s970_s1 + $0x18] sm:$0xff] (!%p157_p3)  ;;  %v204_v56 = vld [vmem:[%s970_s1 + $0x10] sm:$0xff] (!%p157_p3) }
   0xc   : > { %v214_v53 = vld [vmem:[%s970_s1 + $0x60] sm:$0xff] (!%p157_p3)  ;;  %v217_v55 = vld [vmem:[%s970_s1 + $0x78] sm:$0xff] (!%p157_p3)  ;;  %v216_v57 = vld [vmem:[%s970_s1 + $0x70] sm:$0xff] (!%p157_p3) }
   0xd   : > { %v207_v58 = vld [vmem:[%s970_s1 + $0x28] sm:$0xff] (!%p157_p3)  ;;  %v206_v60 = vld [vmem:[%s970_s1 + $0x20] sm:$0xff] (!%p157_p3)  ;;  %v209_v62 = vld [vmem:[%s970_s1 + $0x38] sm:$0xff] (!%p157_p3) }
   0xe   : > { %s978_s12 = smov (!%p186_p4, %s704_s12), 1  ;;  %279 = vperm.xlu1 %689, %v253_v18   ;;  %269 = vperm.xlu0 %688, %v251_v19   ;;  %v219_v59 = vld [vmem:[%s970_s1 + $0x88] sm:$0xff]  ;;  %v218_v61 = vld [vmem:[%s970_s1 + $0x80] sm:$0xff]  ;;  %v221_v63 = vld [vmem:[%s970_s1 + $0x98] sm:$0xff] }
   0xf   : > { %s660_s20 = smul.u32 192, %s978_s12  ;;  %v208_v0 = vld [vmem:[%s970_s1 + $0x30] sm:$0xff]  ;;  %v223_v3 = vld [vmem:[%s970_s1 + $0xa8] sm:$0xff] }
  0x10   : > { %v220_v1 = vld [vmem:[%s970_s1 + $0x90] sm:$0xff]  ;;  %s661_s24 = smul.u32 96, %s978_s12 }
  0x11   : > { %s770_s23 = scalar_lea.vmem %s969_s0, %s660_s20 }
  0x12   : > { %v226_v4 = vld [vmem:[%s770_s23] sm:$0xff]  ;;  %v227_v5 = vld [vmem:[%s770_s23 + $0x8] sm:$0xff]  ;;  %v228_v6 = vld [vmem:[%s770_s23 + $0x10] sm:$0xff]  ;;  %289 = vperm.xlu1 %689, %v255_v23   ;;  %284 = vperm.xlu0 %688, %v254_v24   ;;  %s934_s27 = scalar_lea.vmem %s972_s3, %s661_s24 }
  0x13   : > { %v601_v7 = vpack.c.bf16 %v227_v5, %v226_v4  ;;  %v229_v8 = vld [vmem:[%s770_s23 + $0x18] sm:$0xff]  ;;  %v230_v10 = vld [vmem:[%s770_s23 + $0x20] sm:$0xff]  ;;  %v231_v11 = vld [vmem:[%s770_s23 + $0x28] sm:$0xff] }
  0x14   : > { %v604_v9 = vpack.c.bf16 %v229_v8, %v228_v6  ;;  %v607_v12 = vpack.c.bf16 %v231_v11, %v230_v10  ;;  %v232_v13 = vld [vmem:[%s770_s23 + $0x30] sm:$0xff]  ;;  %v233_v14 = vld [vmem:[%s770_s23 + $0x38] sm:$0xff]  ;;  %v234_v20 = vld [vmem:[%s770_s23 + $0x40] sm:$0xff] }
  0x15   : > { %602 = vmatpush1.bf16.msra.mxu0 %v601_v7  ;;  %648 = vmatpush1.bf16.msra.mxu1 %v601_v7  ;;  %v610_v17 = vpack.c.bf16 %v233_v14, %v232_v13  ;;  %v235_v21 = vld [vmem:[%s770_s23 + $0x48] sm:$0xff]  ;;  %v236_v25 = vld [vmem:[%s770_s23 + $0x50] sm:$0xff]  ;;  %v237_v26 = vld [vmem:[%s770_s23 + $0x58] sm:$0xff] }
  0x16   : > { %603 = vmatprep.subr.bf16.mxu0 %v714_v2  ;;  %637 = vmatprep.subr.bf16.mxu1 %v714_v2  ;;  %v613_v22 = vpack.c.bf16 %v235_v21, %v234_v20  ;;  %v616_v27 = vpack.c.bf16 %v237_v26, %v236_v25  ;;  %v238_v30 = vld [vmem:[%s770_s23 + $0x60] sm:$0xff]  ;;  %v239_v31 = vld [vmem:[%s770_s23 + $0x68] sm:$0xff]  ;;  %v240_v35 = vld [vmem:[%s770_s23 + $0x70] sm:$0xff] }
  0x17   : > { %299 = vperm.xlu1 %689, %v257_v28   ;;  %294 = vperm.xlu0 %688, %v256_v29   ;;  %v619_v32 = vpack.c.bf16 %v239_v31, %v238_v30  ;;  %v241_v36 = vld [vmem:[%s770_s23 + $0x78] sm:$0xff]  ;;  %v242_v40 = vld [vmem:[%s770_s23 + $0x80] sm:$0xff]  ;;  %v243_v41 = vld [vmem:[%s770_s23 + $0x88] sm:$0xff] }
  0x18   : > { %v622_v37 = vpack.c.bf16 %v241_v36, %v240_v35  ;;  %v625_v42 = vpack.c.bf16 %v243_v41, %v242_v40  ;;  %v244_v43 = vld [vmem:[%s770_s23 + $0x90] sm:$0xff]  ;;  %v245_v44 = vld [vmem:[%s770_s23 + $0x98] sm:$0xff]  ;;  %v246_v46 = vld [vmem:[%s770_s23 + $0xa0] sm:$0xff] }
  0x19   : > { %605 = vmatpush1.bf16.msra.mxu0 %v604_v9  ;;  %649 = vmatpush1.bf16.msra.mxu1 %v604_v9  ;;  %v628_v45 = vpack.c.bf16 %v245_v44, %v244_v43  ;;  %v247_v47 = vld [vmem:[%s770_s23 + $0xa8] sm:$0xff]  ;;  %v248_v49 = vld [vmem:[%s770_s23 + $0xb0] sm:$0xff]  ;;  %v249_v50 = vld [vmem:[%s770_s23 + $0xb8] sm:$0xff] }
  0x1a   : > { %606 = vmatprep.subr.bf16.mxu0 %v714_v2  ;;  %638 = vmatprep.subr.bf16.mxu1 %v714_v2  ;;  %v631_v48 = vpack.c.bf16 %v247_v47, %v246_v46  ;;  %v634_v51 = vpack.c.bf16 %v249_v50, %v248_v49  ;;  %v210_v4 = vld [vmem:[%s970_s1 + $0x40] sm:$0xff]  ;;  %v213_v6 = vld [vmem:[%s970_s1 + $0x58] sm:$0xff]  ;;  %v212_v8 = vld [vmem:[%s970_s1 + $0x50] sm:$0xff] }
  0x1b   : > { %309 = vperm.xlu1 %689, %v259_v33   ;;  %304 = vperm.xlu0 %688, %v258_v34   ;;  %v222_v5 = vld [vmem:[%s970_s1 + $0xa0] sm:$0xff]  ;;  %v225_v7 = vld [vmem:[%s970_s1 + $0xb8] sm:$0xff]  ;;  %v224_v9 = vld [vmem:[%s970_s1 + $0xb0] sm:$0xff] }
  0x1d   : > { %608 = vmatpush1.bf16.msra.mxu0 %v607_v12  ;;  %650 = vmatpush1.bf16.msra.mxu1 %v607_v12 }
  0x1e   : > { %609 = vmatprep.subr.bf16.mxu0 %v714_v2  ;;  %639 = vmatprep.subr.bf16.mxu1 %v714_v2 }
  0x1f   : > { %319 = vperm.xlu1 %689, %v261_v38   ;;  %314 = vperm.xlu0 %688, %v260_v39  }
  0x21   : > { %611 = vmatpush1.bf16.msra.mxu0 %v610_v17  ;;  %651 = vmatpush1.bf16.msra.mxu1 %v610_v17 }
  0x22   : > { %612 = vmatprep.subr.bf16.mxu0 %v714_v2  ;;  %640 = vmatprep.subr.bf16.mxu1 %v714_v2 }
  0x25   : > { %614 = vmatpush1.bf16.msra.mxu0 %v613_v22  ;;  %652 = vmatpush1.bf16.msra.mxu1 %v613_v22 }
  0x26   : > { %615 = vmatprep.subr.bf16.mxu0 %v714_v2  ;;  %641 = vmatprep.subr.bf16.mxu1 %v714_v2 }
  0x29   : > { %617 = vmatpush1.bf16.msra.mxu0 %v616_v27  ;;  %653 = vmatpush1.bf16.msra.mxu1 %v616_v27 }
  0x2a   : > { %618 = vmatprep.subr.bf16.mxu0 %v714_v2  ;;  %642 = vmatprep.subr.bf16.mxu1 %v714_v2 }
  0x2d   : > { %620 = vmatpush1.bf16.msra.mxu0 %v619_v32  ;;  %654 = vmatpush1.bf16.msra.mxu1 %v619_v32 }
  0x2e   : > { %621 = vmatprep.subr.bf16.mxu0 %v714_v2  ;;  %643 = vmatprep.subr.bf16.mxu1 %v714_v2 }
  0x31   : > { %623 = vmatpush1.bf16.msra.mxu0 %v622_v37  ;;  %655 = vmatpush1.bf16.msra.mxu1 %v622_v37 }
  0x32   : > { %624 = vmatprep.subr.bf16.mxu0 %v714_v2  ;;  %644 = vmatprep.subr.bf16.mxu1 %v714_v2 }
  0x35   : > { %626 = vmatpush1.bf16.msra.mxu0 %v625_v42  ;;  %656 = vmatpush1.bf16.msra.mxu1 %v625_v42 }
  0x36   : > { %627 = vmatprep.subr.bf16.mxu0 %v714_v2  ;;  %645 = vmatprep.subr.bf16.mxu1 %v714_v2 }
  0x39   : > { %629 = vmatpush1.bf16.msra.mxu0 %v628_v45  ;;  %657 = vmatpush1.bf16.msra.mxu1 %v628_v45 }
  0x3a   : > { %630 = vmatprep.subr.bf16.mxu0 %v714_v2  ;;  %646 = vmatprep.subr.bf16.mxu1 %v714_v2 }
  0x3d   : > { %632 = vmatpush1.bf16.msra.mxu0 %v631_v48  ;;  %658 = vmatpush1.bf16.msra.mxu1 %v631_v48 }
  0x3e   : > { %633 = vmatprep.subr.bf16.mxu0 %v714_v2  ;;  %647 = vmatprep.subr.bf16.mxu1 %v714_v2  ;;  %v211_v2 = vld [vmem:[%s970_s1 + $0x48] sm:$0xff] }
  0x41   : > { %635 = vmatpush1.bf16.msra.mxu0 %v634_v51  ;;  %659 = vmatpush1.bf16.msra.mxu1 %v634_v51 }
  0x44   : > { %424 = vmatmul.mubr.f32.vlgmr.msra.gmra.mrb[0].mxu0 %v202_v52  ;;  %454 = vmatmul.mubr.f32.vlgmr.msra.gmra.mrb[0].mxu1 %v214_v53 }
  0x45   : > { %587 = vmatprep.mubr.msk.f32.mxu0 %vm322_vm0, %v205_v54  ;;  %593 = vmatprep.mubr.msk.f32.mxu1 %vm322_vm0, %v217_v55 }
  0x48   : > { %429 = vmatmul.mubr.f32.gmra.mrb[2].mxu0 %v204_v56  ;;  %459 = vmatmul.mubr.f32.gmra.mrb[2].mxu1 %v216_v57 }
  0x49   : > { %588 = vmatprep.mubr.msk.f32.mxu0 %vm322_vm0, %v207_v58  ;;  %594 = vmatprep.mubr.msk.f32.mxu1 %vm322_vm0, %v219_v59 }
  0x4c   : > { %434 = vmatmul.mubr.f32.gmra.mrb[4].mxu0 %v206_v60  ;;  %464 = vmatmul.mubr.f32.gmra.mrb[4].mxu1 %v218_v61 }
  0x4d   : > { %589 = vmatprep.mubr.msk.f32.mxu0 %vm322_vm0, %v209_v62  ;;  %595 = vmatprep.mubr.msk.f32.mxu1 %vm322_vm0, %v221_v63 }
  0x50   : > { %439 = vmatmul.mubr.f32.gmra.mrb[6].mxu0 %v208_v0  ;;  %469 = vmatmul.mubr.f32.gmra.mrb[6].mxu1 %v220_v1 }
  0x51   : > { %590 = vmatprep.mubr.msk.f32.mxu0 %vm322_vm0, %v211_v2  ;;  %596 = vmatprep.mubr.msk.f32.mxu1 %vm322_vm0, %v223_v3 }
  0x54   : > { %444 = vmatmul.mubr.f32.gmra.mrb[8].mxu0 %v210_v4  ;;  %474 = vmatmul.mubr.f32.gmra.mrb[8].mxu1 %v222_v5 }
  0x55   : > { %591 = vmatprep.mubr.msk.f32.mxu0 %vm322_vm0, %v213_v6  ;;  %597 = vmatprep.mubr.msk.f32.mxu1 %vm322_vm0, %v225_v7 }
  0x58   : > { %449 = vmatmul.mubr.f32.gmra.mrb[10].mxu0 %v212_v8  ;;  %479 = vmatmul.mubr.f32.gmra.mrb[10].mxu1 %v224_v9 }
  0x89   : > { %v265_v10 = vpop.permute.xlu0 %264  ;;  %v275_v11 = vpop.permute.xlu1 %274 }
  0x8d   : > { %v270_v12 = vpop.permute.xlu0 %269  ;;  %v280_v13 = vpop.permute.xlu1 %279 }
  0x91   : > { %v285_v14 = vpop.permute.xlu0 %284  ;;  %v290_v15 = vpop.permute.xlu1 %289 }
  0x96   : > { %v295_v16 = vpop.permute.xlu0 %294  ;;  %v300_v23 = vpop.permute.xlu1 %299 }
  0x9a   : > { %v305_v30 = vpop.permute.xlu0 %304  ;;  %v310_v37 = vpop.permute.xlu1 %309 }
  0x9e   : > { %v315_v44 = vpop.permute.xlu0 %314  ;;  %v320_v51 = vpop.permute.xlu1 %319 }
 0x117   : > { %v425_v17 = vpop.f32.mrb[0].mxu0  ;;  %v455_v18 = vpop.f32.mrb[0].mxu1 }
 0x118   : > { %v426_v19 = vadd.f32 %v425_v17, %v265_v10  ;;  %v456_v20 = vadd.f32 %v455_v18, %v295_v16  ;;  %v427_v21 = vpop.f32.mrb[1].mxu0  ;;  %v457_v22 = vpop.f32.mrb[1].mxu1 }
 0x11a   : > { %484 = vst.msk [vmem:[%s934_s27] sm:$0xff] %vm322_vm0, %v426_v19  ;;  %490 = vst.msk [vmem:[%s934_s27 + $0x30] sm:$0xff] %vm322_vm0, %v456_v20 }
 0x11b   : > { %v430_v24 = vpop.f32.mrb[2].mxu0  ;;  %v460_v25 = vpop.f32.mrb[2].mxu1 }
 0x11c   : > { %v431_v26 = vadd.f32 %v430_v24, %v270_v12  ;;  %v461_v27 = vadd.f32 %v460_v25, %v300_v23  ;;  %v432_v28 = vpop.f32.mrb[3].mxu0  ;;  %v462_v29 = vpop.f32.mrb[3].mxu1 }
 0x11e   : > { %485 = vst.msk [vmem:[%s934_s27 + $0x8] sm:$0xff] %vm322_vm0, %v431_v26  ;;  %491 = vst.msk [vmem:[%s934_s27 + $0x38] sm:$0xff] %vm322_vm0, %v461_v27 }
 0x11f   : > { %v435_v31 = vpop.f32.mrb[4].mxu0  ;;  %v465_v32 = vpop.f32.mrb[4].mxu1 }
 0x120   : > { %v436_v33 = vadd.f32 %v435_v31, %v275_v11  ;;  %v466_v34 = vadd.f32 %v465_v32, %v305_v30  ;;  %v437_v35 = vpop.f32.mrb[5].mxu0  ;;  %v467_v36 = vpop.f32.mrb[5].mxu1 }
 0x122   : > { %486 = vst.msk [vmem:[%s934_s27 + $0x10] sm:$0xff] %vm322_vm0, %v436_v33  ;;  %492 = vst.msk [vmem:[%s934_s27 + $0x40] sm:$0xff] %vm322_vm0, %v466_v34 }
 0x123   : > { %v440_v38 = vpop.f32.mrb[6].mxu0  ;;  %v470_v39 = vpop.f32.mrb[6].mxu1 }
 0x124   : > { %v441_v40 = vadd.f32 %v440_v38, %v280_v13  ;;  %v471_v41 = vadd.f32 %v470_v39, %v310_v37  ;;  %v442_v42 = vpop.f32.mrb[7].mxu0  ;;  %v472_v43 = vpop.f32.mrb[7].mxu1 }
 0x126   : > { %487 = vst.msk [vmem:[%s934_s27 + $0x18] sm:$0xff] %vm322_vm0, %v441_v40  ;;  %493 = vst.msk [vmem:[%s934_s27 + $0x48] sm:$0xff] %vm322_vm0, %v471_v41 }
 0x127   : > { %v445_v45 = vpop.f32.mrb[8].mxu0  ;;  %v475_v46 = vpop.f32.mrb[8].mxu1 }
 0x128   : > { %v446_v47 = vadd.f32 %v445_v45, %v285_v14  ;;  %v476_v48 = vadd.f32 %v475_v46, %v315_v44  ;;  %v447_v49 = vpop.f32.mrb[9].mxu0  ;;  %v477_v50 = vpop.f32.mrb[9].mxu1 }
 0x12a   : > { %488 = vst.msk [vmem:[%s934_s27 + $0x20] sm:$0xff] %vm322_vm0, %v446_v47  ;;  %494 = vst.msk [vmem:[%s934_s27 + $0x50] sm:$0xff] %vm322_vm0, %v476_v48 }
 0x12b   : > { %v450_v52 = vpop.f32.mrb[10].mxu0  ;;  %v480_v53 = vpop.f32.mrb[10].mxu1 }
 0x12c   : > { %v451_v54 = vadd.f32 %v450_v52, %v290_v15  ;;  %v481_v55 = vadd.f32 %v480_v53, %v320_v51  ;;  %v452_v56 = vpop.f32.mrb[11].mxu0  ;;  %v482_v57 = vpop.f32.mrb[11].mxu1 }
 0x12e   : > { %489 = vst.msk [vmem:[%s934_s27 + $0x28] sm:$0xff] %vm322_vm0, %v451_v54  ;;  %495 = vst.msk [vmem:[%s934_s27 + $0x58] sm:$0xff] %vm322_vm0, %v481_v55 }
 0x12f PF: > { %s13_s14 = sadd.s32 1, %s712_s14   ;;  %s973_s12 = smov %s708_s13 }
 0x130   : > { %p10_p5 = scmp.ge.s32.totalorder %s13_s14, 4   ;;  %s974_s13 = smov %s976_s15 }
 0x132   :  { %12 = sbr.rel (!%p10_p5) target bundleno = 2 (0x2), region = 62 }

</bundles_post_ra>
